<compile_context>
chip_gen: v7x
topology: tpu7x:2x2x1
jax: 0.10.0
libtpu: 0.0.40
codegen_flags: <defaults>
</compile_context>

<pallas_src>
import functools
import math

import jax
import jax.numpy as jnp
from jax.experimental import pallas as pl
from jax.experimental.pallas import tpu as pltpu


def _mha_kernel(q_ref, k_ref, w_qv_ref, b_qv_ref, w_out_ref, b_out_ref,
                o_ref, concat_ref, *, heads, d_k, scale):
    """One batch element per grid step; all heads processed inside the step.

    q_ref  : (1, S, d_model)  raw q input
    k_ref  : (1, S, d_model)  raw k input (k_linear == Identity)
    w_qv   : (d_model, 2*d_model),  b_qv : (1, 2*d_model)
    w_out  : (d_model, d_model),    b_out: (1, d_model)
    o_ref  : (1, S, d_model)  lane-dense output (= concat @ W_out + b_out)
    concat_ref : (S, d_model) f32 VMEM scratch holding the per-head outputs.
    """
    d_model = heads * d_k

    q_in = q_ref[0]                       # (S, d_model)
    k_in = k_ref[0]                       # (S, d_model)

    # qv_linear: single-pass MXU matmul, f32 accumulation.
    qv = jnp.dot(q_in, w_qv_ref[...], preferred_element_type=jnp.float32)
    qv = qv + b_qv_ref[...].astype(jnp.float32)        # (S, 2*d_model) f32

    # Per-head attention.  Heads are static lane slices of the qv / k slabs;
    # each head's output is written lane-densely at offset h*d_k so the scratch
    # ends up in the module's "concat" layout without any transpose.
    # TODO(synk): for long sequences (S >~ 1-2k) tile the key axis flash-style
    # (online softmax) so the (S, S) score tile never has to fit in VMEM
    # (required on v7x's 64 MiB VMEM / v5e's 16 MiB scoped default).
    for h in range(heads):
        lo = h * d_k
        q_h = qv[:, lo:lo + d_k]                                 # (S, d_k)
        v_h = qv[:, d_model + lo:d_model + lo + d_k]             # (S, d_k)
        k_h = k_in[:, lo:lo + d_k]                               # (S, d_k)

        # scores = q_h @ k_h^T * scale  (contraction over d_k)
        s = jax.lax.dot_general(
            q_h, k_h,
            dimension_numbers=(((1,), (1,)), ((), ())),
            preferred_element_type=jnp.float32,
        ) * scale                                                 # (S, S)

        # numerically-stable softmax over the key axis
        m = jnp.max(s, axis=-1, keepdims=True)
        p = jnp.exp(s - m)
        l = jnp.sum(p, axis=-1, keepdims=True)

        o_h = jnp.dot(p, v_h, preferred_element_type=jnp.float32)
        o_h = o_h * pl.reciprocal(l, approx=True)                 # EUP divide
        concat_ref[:, lo:lo + d_k] = o_h

    # Fused output projection (removes the `concat` HBM write+read): one big
    # lane-dense matmul with full d_model contraction.
    concat = concat_ref[...]                                      # (S, d_model) f32
    out = jnp.dot(concat, w_out_ref[...], preferred_element_type=jnp.float32)
    out = out + b_out_ref[...].astype(jnp.float32)
    o_ref[0] = out.astype(o_ref.dtype)


def mha_forward(q, k, v, params, heads):
    """Eval-mode forward of MultiHeadAttention (do_drop_k=True -> k_linear = Identity)."""
    del v  # the module re-derives v from q via qv_linear; forward's v arg is unused
    B, S, d_model = q.shape
    assert k.shape == (B, S, d_model), "module requires matching q/k shapes"
    assert d_model % heads == 0
    d_k = d_model // heads
    scale = 1.0 / math.sqrt(d_k)

    w_qv = params["w_qv"]                       # (d_model, 2*d_model)
    b_qv = params["b_qv"].reshape(1, 2 * d_model)
    w_out = params["w_out"]                     # (d_model, d_model)
    b_out = params["b_out"].reshape(1, d_model)

    kernel = functools.partial(_mha_kernel, heads=heads, d_k=d_k, scale=scale)

    return pl.pallas_call(
        kernel,
        out_shape=jax.ShapeDtypeStruct((B, S, d_model), q.dtype),
        grid_spec=pltpu.PrefetchScalarGridSpec(
            num_scalar_prefetch=0,
            grid=(B,),
            in_specs=[
                pl.BlockSpec((1, S, d_model), lambda b: (b, 0, 0)),      # q
                pl.BlockSpec((1, S, d_model), lambda b: (b, 0, 0)),      # k
                pl.BlockSpec((d_model, 2 * d_model), lambda b: (0, 0)),  # w_qv (resident)
                pl.BlockSpec((1, 2 * d_model), lambda b: (0, 0)),        # b_qv (resident)
                pl.BlockSpec((d_model, d_model), lambda b: (0, 0)),      # w_out (resident)
                pl.BlockSpec((1, d_model), lambda b: (0, 0)),            # b_out (resident)
            ],
            out_specs=pl.BlockSpec((1, S, d_model), lambda b: (b, 0, 0)),
            scratch_shapes=[pltpu.VMEM((S, d_model), jnp.float32)],      # concat slab
        ),
        compiler_params=pltpu.CompilerParams(
            dimension_semantics=("parallel",),
            # Lift v5e's 16 MiB scoped default; matches the v6e/v7x defaults and
            # leaves plenty of headroom for the per-batch activation slabs.
            vmem_limit_bytes=32 * 1024 * 1024,
        ),
    )(q, k, w_qv, b_qv, w_out, b_out)


# ---------------------------------------------------------------------------
# Pure-JAX reference (f32, HIGHEST precision) — same weights, same semantics.
# ---------------------------------------------------------------------------
def mha_reference(q, k, v, params, heads):
    del v
    B, S, d_model = q.shape
    d_k = d_model // heads
    scale = 1.0 / math.sqrt(d_k)
    hi = jax.lax.Precision.HIGHEST

    qv = jnp.dot(q, params["w_qv"], precision=hi) + params["b_qv"]
    q_p, v_p = qv[..., :d_model], qv[..., d_model:]

    def split_heads(x):
        return x.reshape(B, S, heads, d_k).transpose(0, 2, 1, 3)

    qh, vh, kh = split_heads(q_p), split_heads(v_p), split_heads(k)
    s = jnp.einsum("bhqd,bhkd->bhqk", qh, kh, precision=hi) * scale
    p = jax.nn.softmax(s, axis=-1)
    o = jnp.einsum("bhqk,bhkd->bhqd", p, vh, precision=hi)
    concat = o.transpose(0, 2, 1, 3).reshape(B, S, d_model)
    return jnp.dot(concat, params["w_out"], precision=hi) + params["b_out"]


if __name__ == "__main__":
    key = jax.random.PRNGKey(0)
    batch, seq, d_model, heads = 2, 8, 32, 4

    kq, kk, kv, k1, k2, k3, k4 = jax.random.split(key, 7)
    q = jax.random.normal(kq, (batch, seq, d_model), dtype=jnp.float32)
    k = jax.random.normal(kk, (batch, seq, d_model), dtype=jnp.float32)
    v = jax.random.normal(kv, (batch, seq, d_model), dtype=jnp.float32)  # unused by the module

    w_scale = 1.0 / math.sqrt(d_model)
    params = {
        "w_qv": jax.random.normal(k1, (d_model, 2 * d_model), jnp.float32) * w_scale,
        "b_qv": jax.random.normal(k2, (2 * d_model,), jnp.float32) * 0.1,
        "w_out": jax.random.normal(k3, (d_model, d_model), jnp.float32) * w_scale,
        "b_out": jax.random.normal(k4, (d_model,), jnp.float32) * 0.1,
    }

    out = jax.block_until_ready(mha_forward(q, k, v, params, heads))
    ref = mha_reference(q, k, v, params, heads)

    assert out.shape == (batch, seq, d_model)
    # Kernel matmuls run as single-pass bf16 MXU passes with f32 accumulation
    # (no Precision.HIGHEST), plus an approx EUP reciprocal in the softmax, so
    # compare against the true-f32 reference with a correspondingly loosened
    # tolerance.
    assert jnp.allclose(out, ref, atol=5e-2, rtol=5e-2), "mismatch vs reference"

    print("KERNEL_OK")
</pallas_src>

<mosaic_0001>
module attributes {stable_mosaic.version = 11 : i64} {
  func.func @_mha_kernel(%arg0: i32, %arg1: memref<1x8x32xf32, #tpu.memory_space<vmem>>, %arg2: memref<1x8x32xf32, #tpu.memory_space<vmem>>, %arg3: memref<32x64xf32, #tpu.memory_space<vmem>>, %arg4: memref<1x64xf32, #tpu.memory_space<vmem>>, %arg5: memref<32x32xf32, #tpu.memory_space<vmem>>, %arg6: memref<1x32xf32, #tpu.memory_space<vmem>>, %arg7: memref<1x8x32xf32, #tpu.memory_space<vmem>>, %arg8: memref<8x32xf32, #tpu.memory_space<vmem>>) attributes {dimension_semantics = [#tpu.dimension_semantics<parallel>], iteration_bounds = array<i64: 2>, scalar_prefetch = 0 : i64, scratch_operands = 1 : i64, tpu.core_type = #tpu.core_type<tc>, window_params = [{transform_indices = @transform_0, window_bounds = array<i64: 1, 8, 32>}, {transform_indices = @transform_1, window_bounds = array<i64: 1, 8, 32>}, {pipeline_mode = #tpu.pipeline_mode<synchronous>, transform_indices = @transform_2, window_bounds = array<i64: 32, 64>}, {pipeline_mode = #tpu.pipeline_mode<synchronous>, transform_indices = @transform_3, window_bounds = array<i64: 1, 64>}, {pipeline_mode = #tpu.pipeline_mode<synchronous>, transform_indices = @transform_4, window_bounds = array<i64: 32, 32>}, {pipeline_mode = #tpu.pipeline_mode<synchronous>, transform_indices = @transform_5, window_bounds = array<i64: 1, 32>}, {transform_indices = @transform_6, window_bounds = array<i64: 1, 8, 32>}]} {
    %c0 = arith.constant 0 : index
    %c0_0 = arith.constant 0 : index
    %c0_1 = arith.constant 0 : index
    %0 = vector.load %arg1[%c0, %c0_0, %c0_1] : memref<1x8x32xf32, #tpu.memory_space<vmem>>, vector<1x8x32xf32>
    %1 = vector.shape_cast %0 : vector<1x8x32xf32> to vector<8x32xf32>
    %c0_2 = arith.constant 0 : index
    %c0_3 = arith.constant 0 : index
    %c0_4 = arith.constant 0 : index
    %2 = vector.load %arg2[%c0_2, %c0_3, %c0_4] : memref<1x8x32xf32, #tpu.memory_space<vmem>>, vector<1x8x32xf32>
    %3 = vector.shape_cast %2 : vector<1x8x32xf32> to vector<8x32xf32>
    %c0_5 = arith.constant 0 : index
    %c0_6 = arith.constant 0 : index
    %4 = vector.load %arg3[%c0_5, %c0_6] : memref<32x64xf32, #tpu.memory_space<vmem>>, vector<32x64xf32>
    %cst = arith.constant dense<0.000000e+00> : vector<8x64xf32>
    %5 = tpu.matmul %1, %4, %cst {dimension_numbers = #tpu.dot_dimension_numbers<[1], [0], [0], [1], [0, 0, 1, 1], [], []>} : vector<8x32xf32>, vector<32x64xf32>, vector<8x64xf32> -> vector<8x64xf32>
    %c0_7 = arith.constant 0 : index
    %c0_8 = arith.constant 0 : index
    %6 = vector.load %arg4[%c0_7, %c0_8] : memref<1x64xf32, #tpu.memory_space<vmem>>, vector<1x64xf32>
    %7 = vector.broadcast %6 : vector<1x64xf32> to vector<8x64xf32>
    %8 = arith.addf %5, %7 : vector<8x64xf32>
    %9 = vector.extract_strided_slice %8 {offsets = [0, 0], sizes = [8, 8], strides = [1, 1]} : vector<8x64xf32> to vector<8x8xf32>
    %10 = vector.extract_strided_slice %8 {offsets = [0, 32], sizes = [8, 8], strides = [1, 1]} : vector<8x64xf32> to vector<8x8xf32>
    %11 = vector.extract_strided_slice %3 {offsets = [0, 0], sizes = [8, 8], strides = [1, 1]} : vector<8x32xf32> to vector<8x8xf32>
    %cst_9 = arith.constant dense<0.000000e+00> : vector<8x8xf32>
    %12 = tpu.matmul %9, %11, %cst_9 {dimension_numbers = #tpu.dot_dimension_numbers<[1], [1], [0], [0], [0, 0, 1, 0], [], []>} : vector<8x8xf32>, vector<8x8xf32>, vector<8x8xf32> -> vector<8x8xf32>
    %cst_10 = arith.constant 0.353553385 : f32
    %13 = vector.broadcast %cst_10 : f32 to vector<8x8xf32>
    %14 = arith.mulf %12, %13 : vector<8x8xf32>
    %cst_11 = arith.constant dense<0xFF800000> : vector<8xf32>
    %15 = vector.multi_reduction <maximumf>, %14, %cst_11 [1] : vector<8x8xf32> to vector<8xf32>
    %16 = vector.shape_cast %15 : vector<8xf32> to vector<8x1xf32>
    %17 = vector.broadcast %16 : vector<8x1xf32> to vector<8x8xf32>
    %18 = arith.subf %14, %17 : vector<8x8xf32>
    %19 = math.exp %18 : vector<8x8xf32>
    %cst_12 = arith.constant dense<0.000000e+00> : vector<8xf32>
    %20 = vector.multi_reduction <add>, %19, %cst_12 [1] : vector<8x8xf32> to vector<8xf32>
    %21 = vector.shape_cast %20 : vector<8xf32> to vector<8x1xf32>
    %cst_13 = arith.constant dense<0.000000e+00> : vector<8x8xf32>
    %22 = tpu.matmul %19, %10, %cst_13 {dimension_numbers = #tpu.dot_dimension_numbers<[1], [0], [0], [1], [0, 0, 1, 1], [], []>} : vector<8x8xf32>, vector<8x8xf32>, vector<8x8xf32> -> vector<8x8xf32>
    %23 = tpu.reciprocal %21 {approx = true} : vector<8x1xf32> -> vector<8x1xf32>
    %24 = vector.broadcast %23 : vector<8x1xf32> to vector<8x8xf32>
    %25 = arith.mulf %22, %24 : vector<8x8xf32>
    %c0_14 = arith.constant 0 : index
    %c0_15 = arith.constant 0 : index
    %26 = vector.load %arg8[%c0_14, %c0_15] : memref<8x32xf32, #tpu.memory_space<vmem>>, vector<8x8xf32>
    tpu.vector_store %arg8[%c0_14, %c0_15], %25 {strides = array<i32>} : memref<8x32xf32, #tpu.memory_space<vmem>>, vector<8x8xf32>,
    %27 = vector.extract_strided_slice %8 {offsets = [0, 8], sizes = [8, 8], strides = [1, 1]} : vector<8x64xf32> to vector<8x8xf32>
    %28 = vector.extract_strided_slice %8 {offsets = [0, 40], sizes = [8, 8], strides = [1, 1]} : vector<8x64xf32> to vector<8x8xf32>
    %29 = vector.extract_strided_slice %3 {offsets = [0, 8], sizes = [8, 8], strides = [1, 1]} : vector<8x32xf32> to vector<8x8xf32>
    %cst_16 = arith.constant dense<0.000000e+00> : vector<8x8xf32>
    %30 = tpu.matmul %27, %29, %cst_16 {dimension_numbers = #tpu.dot_dimension_numbers<[1], [1], [0], [0], [0, 0, 1, 0], [], []>} : vector<8x8xf32>, vector<8x8xf32>, vector<8x8xf32> -> vector<8x8xf32>
    %cst_17 = arith.constant 0.353553385 : f32
    %31 = vector.broadcast %cst_17 : f32 to vector<8x8xf32>
    %32 = arith.mulf %30, %31 : vector<8x8xf32>
    %cst_18 = arith.constant dense<0xFF800000> : vector<8xf32>
    %33 = vector.multi_reduction <maximumf>, %32, %cst_18 [1] : vector<8x8xf32> to vector<8xf32>
    %34 = vector.shape_cast %33 : vector<8xf32> to vector<8x1xf32>
    %35 = vector.broadcast %34 : vector<8x1xf32> to vector<8x8xf32>
    %36 = arith.subf %32, %35 : vector<8x8xf32>
    %37 = math.exp %36 : vector<8x8xf32>
    %cst_19 = arith.constant dense<0.000000e+00> : vector<8xf32>
    %38 = vector.multi_reduction <add>, %37, %cst_19 [1] : vector<8x8xf32> to vector<8xf32>
    %39 = vector.shape_cast %38 : vector<8xf32> to vector<8x1xf32>
    %cst_20 = arith.constant dense<0.000000e+00> : vector<8x8xf32>
    %40 = tpu.matmul %37, %28, %cst_20 {dimension_numbers = #tpu.dot_dimension_numbers<[1], [0], [0], [1], [0, 0, 1, 1], [], []>} : vector<8x8xf32>, vector<8x8xf32>, vector<8x8xf32> -> vector<8x8xf32>
    %41 = tpu.reciprocal %39 {approx = true} : vector<8x1xf32> -> vector<8x1xf32>
    %42 = vector.broadcast %41 : vector<8x1xf32> to vector<8x8xf32>
    %43 = arith.mulf %40, %42 : vector<8x8xf32>
    %c0_21 = arith.constant 0 : index
    %c8 = arith.constant 8 : index
    %44 = vector.load %arg8[%c0_21, %c8] : memref<8x32xf32, #tpu.memory_space<vmem>>, vector<8x8xf32>
    tpu.vector_store %arg8[%c0_21, %c8], %43 {strides = array<i32>} : memref<8x32xf32, #tpu.memory_space<vmem>>, vector<8x8xf32>,
    %45 = vector.extract_strided_slice %8 {offsets = [0, 16], sizes = [8, 8], strides = [1, 1]} : vector<8x64xf32> to vector<8x8xf32>
    %46 = vector.extract_strided_slice %8 {offsets = [0, 48], sizes = [8, 8], strides = [1, 1]} : vector<8x64xf32> to vector<8x8xf32>
    %47 = vector.extract_strided_slice %3 {offsets = [0, 16], sizes = [8, 8], strides = [1, 1]} : vector<8x32xf32> to vector<8x8xf32>
    %cst_22 = arith.constant dense<0.000000e+00> : vector<8x8xf32>
    %48 = tpu.matmul %45, %47, %cst_22 {dimension_numbers = #tpu.dot_dimension_numbers<[1], [1], [0], [0], [0, 0, 1, 0], [], []>} : vector<8x8xf32>, vector<8x8xf32>, vector<8x8xf32> -> vector<8x8xf32>
    %cst_23 = arith.constant 0.353553385 : f32
    %49 = vector.broadcast %cst_23 : f32 to vector<8x8xf32>
    %50 = arith.mulf %48, %49 : vector<8x8xf32>
    %cst_24 = arith.constant dense<0xFF800000> : vector<8xf32>
    %51 = vector.multi_reduction <maximumf>, %50, %cst_24 [1] : vector<8x8xf32> to vector<8xf32>
    %52 = vector.shape_cast %51 : vector<8xf32> to vector<8x1xf32>
    %53 = vector.broadcast %52 : vector<8x1xf32> to vector<8x8xf32>
    %54 = arith.subf %50, %53 : vector<8x8xf32>
    %55 = math.exp %54 : vector<8x8xf32>
    %cst_25 = arith.constant dense<0.000000e+00> : vector<8xf32>
    %56 = vector.multi_reduction <add>, %55, %cst_25 [1] : vector<8x8xf32> to vector<8xf32>
    %57 = vector.shape_cast %56 : vector<8xf32> to vector<8x1xf32>
    %cst_26 = arith.constant dense<0.000000e+00> : vector<8x8xf32>
    %58 = tpu.matmul %55, %46, %cst_26 {dimension_numbers = #tpu.dot_dimension_numbers<[1], [0], [0], [1], [0, 0, 1, 1], [], []>} : vector<8x8xf32>, vector<8x8xf32>, vector<8x8xf32> -> vector<8x8xf32>
    %59 = tpu.reciprocal %57 {approx = true} : vector<8x1xf32> -> vector<8x1xf32>
    %60 = vector.broadcast %59 : vector<8x1xf32> to vector<8x8xf32>
    %61 = arith.mulf %58, %60 : vector<8x8xf32>
    %c0_27 = arith.constant 0 : index
    %c16 = arith.constant 16 : index
    %62 = vector.load %arg8[%c0_27, %c16] : memref<8x32xf32, #tpu.memory_space<vmem>>, vector<8x8xf32>
    tpu.vector_store %arg8[%c0_27, %c16], %61 {strides = array<i32>} : memref<8x32xf32, #tpu.memory_space<vmem>>, vector<8x8xf32>,
    %63 = vector.extract_strided_slice %8 {offsets = [0, 24], sizes = [8, 8], strides = [1, 1]} : vector<8x64xf32> to vector<8x8xf32>
    %64 = vector.extract_strided_slice %8 {offsets = [0, 56], sizes = [8, 8], strides = [1, 1]} : vector<8x64xf32> to vector<8x8xf32>
    %65 = vector.extract_strided_slice %3 {offsets = [0, 24], sizes = [8, 8], strides = [1, 1]} : vector<8x32xf32> to vector<8x8xf32>
    %cst_28 = arith.constant dense<0.000000e+00> : vector<8x8xf32>
    %66 = tpu.matmul %63, %65, %cst_28 {dimension_numbers = #tpu.dot_dimension_numbers<[1], [1], [0], [0], [0, 0, 1, 0], [], []>} : vector<8x8xf32>, vector<8x8xf32>, vector<8x8xf32> -> vector<8x8xf32>
    %cst_29 = arith.constant 0.353553385 : f32
    %67 = vector.broadcast %cst_29 : f32 to vector<8x8xf32>
    %68 = arith.mulf %66, %67 : vector<8x8xf32>
    %cst_30 = arith.constant dense<0xFF800000> : vector<8xf32>
    %69 = vector.multi_reduction <maximumf>, %68, %cst_30 [1] : vector<8x8xf32> to vector<8xf32>
    %70 = vector.shape_cast %69 : vector<8xf32> to vector<8x1xf32>
    %71 = vector.broadcast %70 : vector<8x1xf32> to vector<8x8xf32>
    %72 = arith.subf %68, %71 : vector<8x8xf32>
    %73 = math.exp %72 : vector<8x8xf32>
    %cst_31 = arith.constant dense<0.000000e+00> : vector<8xf32>
    %74 = vector.multi_reduction <add>, %73, %cst_31 [1] : vector<8x8xf32> to vector<8xf32>
    %75 = vector.shape_cast %74 : vector<8xf32> to vector<8x1xf32>
    %cst_32 = arith.constant dense<0.000000e+00> : vector<8x8xf32>
    %76 = tpu.matmul %73, %64, %cst_32 {dimension_numbers = #tpu.dot_dimension_numbers<[1], [0], [0], [1], [0, 0, 1, 1], [], []>} : vector<8x8xf32>, vector<8x8xf32>, vector<8x8xf32> -> vector<8x8xf32>
    %77 = tpu.reciprocal %75 {approx = true} : vector<8x1xf32> -> vector<8x1xf32>
    %78 = vector.broadcast %77 : vector<8x1xf32> to vector<8x8xf32>
    %79 = arith.mulf %76, %78 : vector<8x8xf32>
    %c0_33 = arith.constant 0 : index
    %c24 = arith.constant 24 : index
    %80 = vector.load %arg8[%c0_33, %c24] : memref<8x32xf32, #tpu.memory_space<vmem>>, vector<8x8xf32>
    tpu.vector_store %arg8[%c0_33, %c24], %79 {strides = array<i32>} : memref<8x32xf32, #tpu.memory_space<vmem>>, vector<8x8xf32>,
    %c0_34 = arith.constant 0 : index
    %c0_35 = arith.constant 0 : index
    %81 = vector.load %arg8[%c0_34, %c0_35] : memref<8x32xf32, #tpu.memory_space<vmem>>, vector<8x32xf32>
    %c0_36 = arith.constant 0 : index
    %c0_37 = arith.constant 0 : index
    %82 = vector.load %arg5[%c0_36, %c0_37] : memref<32x32xf32, #tpu.memory_space<vmem>>, vector<32x32xf32>
    %cst_38 = arith.constant dense<0.000000e+00> : vector<8x32xf32>
    %83 = tpu.matmul %81, %82, %cst_38 {dimension_numbers = #tpu.dot_dimension_numbers<[1], [0], [0], [1], [0, 0, 1, 1], [], []>} : vector<8x32xf32>, vector<32x32xf32>, vector<8x32xf32> -> vector<8x32xf32>
    %c0_39 = arith.constant 0 : index
    %c0_40 = arith.constant 0 : index
    %84 = vector.load %arg6[%c0_39, %c0_40] : memref<1x32xf32, #tpu.memory_space<vmem>>, vector<1x32xf32>
    %85 = vector.broadcast %84 : vector<1x32xf32> to vector<8x32xf32>
    %86 = arith.addf %83, %85 : vector<8x32xf32>
    %c0_41 = arith.constant 0 : index
    %c0_42 = arith.constant 0 : index
    %c0_43 = arith.constant 0 : index
    %87 = vector.load %arg7[%c0_41, %c0_42, %c0_43] : memref<1x8x32xf32, #tpu.memory_space<vmem>>, vector<1x8x32xf32>
    %88 = vector.shape_cast %87 : vector<1x8x32xf32> to vector<8x32xf32>
    %89 = vector.shape_cast %86 : vector<8x32xf32> to vector<1x8x32xf32>
    tpu.vector_store %arg7[%c0_41, %c0_42, %c0_43], %89 {strides = array<i32>} : memref<1x8x32xf32, #tpu.memory_space<vmem>>, vector<1x8x32xf32>,
    return
  }
  func.func @transform_0(%arg0: i32) -> (i32, i32, i32) {
    %c0_i32 = arith.constant 0 : i32
    %c0_i32_0 = arith.constant 0 : i32
    %c0_i32_1 = arith.constant 0 : i32
    return %arg0, %c0_i32, %c0_i32_0 : i32, i32, i32
  }
  func.func @transform_1(%arg0: i32) -> (i32, i32, i32) {
    %c0_i32 = arith.constant 0 : i32
    %c0_i32_0 = arith.constant 0 : i32
    %c0_i32_1 = arith.constant 0 : i32
    return %arg0, %c0_i32, %c0_i32_0 : i32, i32, i32
  }
  func.func @transform_2(%arg0: i32) -> (i32, i32) {
    %c0_i32 = arith.constant 0 : i32
    %c0_i32_0 = arith.constant 0 : i32
    %c0_i32_1 = arith.constant 0 : i32
    return %c0_i32, %c0_i32_0 : i32, i32
  }
  func.func @transform_3(%arg0: i32) -> (i32, i32) {
    %c0_i32 = arith.constant 0 : i32
    %c0_i32_0 = arith.constant 0 : i32
    %c0_i32_1 = arith.constant 0 : i32
    return %c0_i32, %c0_i32_0 : i32, i32
  }
  func.func @transform_4(%arg0: i32) -> (i32, i32) {
    %c0_i32 = arith.constant 0 : i32
    %c0_i32_0 = arith.constant 0 : i32
    %c0_i32_1 = arith.constant 0 : i32
    return %c0_i32, %c0_i32_0 : i32, i32
  }
  func.func @transform_5(%arg0: i32) -> (i32, i32) {
    %c0_i32 = arith.constant 0 : i32
    %c0_i32_0 = arith.constant 0 : i32
    %c0_i32_1 = arith.constant 0 : i32
    return %c0_i32, %c0_i32_0 : i32, i32
  }
  func.func @transform_6(%arg0: i32) -> (i32, i32, i32) {
    %c0_i32 = arith.constant 0 : i32
    %c0_i32_0 = arith.constant 0 : i32
    %c0_i32_1 = arith.constant 0 : i32
    return %arg0, %c0_i32, %c0_i32_0 : i32, i32, i32
  }
}

</mosaic_0001>

<bundles_post_ra>
// kernel: tpu_custom_call.1
= control target key start
LH: loop header
LB: loop body
LE: loop exit
PB: predicated region body
PF: predicated region fallthrough
CT: control target
= control target key end

     0   :  { %s2151_s0 = inlined_call_operand.hbm [shape: f32[2,8,32], index: 0, kind: input, shape index: {}]   ;;  %s2152_s1 = inlined_call_operand.hbm [shape: f32[2,8,32], index: 1, kind: input, shape index: {}]   ;;  %s2153_s2 = inlined_call_operand.hbm [shape: f32[32,64], index: 2, kind: input, shape index: {}]   ;;  %s2154_s3 = inlined_call_operand.vmem [shape: f32[1,64], index: 3, kind: input, shape index: {}]   ;;  %s2155_s4 = inlined_call_operand.hbm [shape: f32[32,32], index: 4, kind: input, shape index: {}]   ;;  %s2156_s5 = inlined_call_operand.vmem [shape: f32[1,32], index: 5, kind: input, shape index: {}]   ;;  %s2157_s6 = inlined_call_operand.hbm [shape: f32[2,8,32], index: 6, kind: output, shape index: {}]  }
   0x1   :  { %2162 = sst [smem:[#allocation18_spill]] %s2153_s2 }
   0x2   :  { %2163 = sst [smem:[#allocation19_spill]] %s2155_s4 }
   0x3   :  { %11 = vsyncpa [#allocation4], 0 }
   0x4   :  { %13 = vsyncpa [#allocation4 + $0x1], 0 }
   0x5   :  { %14 = vsyncpa [#allocation7], 0 }
   0x6   :  { %16 = vsyncpa [#allocation7 + $0x1], 0 }
   0x7   :  { %17 = vsyncpa [#allocation10], 0 }
   0x8   :  { %18 = vsyncpa [#allocation5], 0 }
   0x9   :  { %20 = vsyncpa [#allocation5 + $0x1], 0  ;;  %s1803_s21 = smov 0   ;;  %s1805_s22 = smov 0  }
   0xa   :  { %s1807_s23 = smov 0   ;;  %s1809_s24 = smov 0  }
   0xb LB: > { %s1824_s25 = sadd.s32 4294967295, %s1746_s24   ;;  %s1314_s26 = sadd.s32 4294967294, %s1746_s24   ;;  %s1746_s24 = sphi %s1809_s24, %s2187_s24   ;;  %s1742_s23 = sphi %s1807_s23, %s2186_s23   ;;  %s1738_s22 = sphi %s1805_s22, %s2185_s22   ;;  %s1734_s21 = sphi %s1803_s21, %s2184_s21  }
   0xc   : > { %p46_p0 = scmp.ne.s32.totalorder %s1738_s22, %s1734_s21  ;;  %p2158_p1 = scmp.eq.s32.totalorder %s1824_s25, 0 }
   0xd   : > { %p186_p3 = scmp.eq.s32.totalorder %s1314_s26, 1  ;;  %p1315_p5 = scmp.ge.s32.totalorder %s1746_s24, 1 }
   0xe   : > { %p1833_p4 = por %p2158_p1, %p46_p0  ;;  %p193_p7 = scmp.lt.s32.totalorder %s1746_s24, 3 }
   0xf   : > { %p1838_p6 = por %p186_p3, %p46_p0  ;;  %s1748_s30 = smov [#allocation8]  }
  0x10   : > { %s2164_s27 = scalar_select %p1833_p4, 1, 0 }
  0x11   : > { %s2165_s28 = scalar_select %p1838_p6, 1, 0 }
  0x12   : > { %p1843_p8 = pnand %p1315_p5, %p193_p7  ;;  %s205_s7 = sshll.u32 %s1748_s30, 4  ;;  %s1847_s7 = int_to_ptr.vmem [resolvable:$true] %s205_s7 }
  0x13   : > { %s1749_s9 = smov [#allocation9]   ;;  %s2168_s2 = sld [smem:[#allocation18_spill]] }
  0x14   : > { %s2166_s29 = scalar_select %p1843_p8, 1, 0 }
  0x15   : > { %p1463_p9 = pneg %p1843_p8  ;;  %s221_s10 = sshll.u32 %s1749_s9, 4  ;;  %s1858_s10 = int_to_ptr.vmem [resolvable:$true] %s221_s10 }
  0x17   : > { %p1854_p11 = pnand %p1463_p9, %p2158_p1 }
  0x19   : > { %s1552_s13 = scalar_lea.hbm %s2168_s2, 512  ;;  %p1554_p13 = pneg %p1854_p11 }
  0x1a   : > { %p1553_p12 = scmp.ne.s32.totalorder %s2168_s2, %s1552_s13  ;;  %p1559_p5 = scmp.lt.u32.totalorder %s1552_s13, %s2168_s2 }
  0x1c   : > { %p1555_p0 = pnand %p1554_p13, %p1553_p12 }
  0x1e   : > { %p1556_p3 = pneg %p1555_p0 }
  0x20   : > { %p1561_p7 = pnand %p1559_p5, %p1556_p3 }
  0x22   : > { %1564 = shalt.err (!%p1561_p7)
}
  0x23   : > { %s1565_s18 = scalar_lea.vmem %s1847_s7, 512  ;;  %p1573_p2 = scmp.lt.s32.totalorder %s1847_s7, %s1847_s7 }
  0x24   : > { %p1566_p9 = scmp.ne.s32.totalorder %s1847_s7, %s1565_s18  ;;  %p1574_p12 = scmp.lt.s32.totalorder %s1565_s18, %s1565_s18 }
  0x26   : > { %p1568_p10 = pnand %p1566_p9, %p1554_p13  ;;  %p1575_p0 = por %p1574_p12, %p1573_p2 }
  0x28   : > { %p1569_p1 = pneg %p1568_p10 }
  0x2a   : > { %p1576_p6 = pnand %p1575_p0, %p1569_p1 }
  0x2c   : > { %1579 = shalt.err (!%p1576_p6)
}
  0x2d   : > { %s1750_s19 = smov 128   ;;  %s1751_s20 = smov 8  }
  0x2e   : > { %1466 = dma.hbm_to_vmem [thread:$0]  (!%p1854_p11), %s2168_s2, 512, %s1847_s7, [#allocation7], %s1750_s19, %s1750_s19, %s1751_s20  }
  0x2f   : > { %s2169_s4 = sld [smem:[#allocation19_spill]] }
  0x35   : > { %s1580_s12 = scalar_lea.hbm %s2169_s4, 512 }
  0x36   : > { %p1581_p2 = scmp.ne.s32.totalorder %s2169_s4, %s1580_s12  ;;  %p1587_p10 = scmp.lt.u32.totalorder %s1580_s12, %s2169_s4 }
  0x38   : > { %p1583_p1 = pnand %p1581_p2, %p1554_p13 }
  0x3a   : > { %p1584_p6 = pneg %p1583_p1 }
  0x3c   : > { %p1589_p3 = pnand %p1587_p10, %p1584_p6 }
  0x3e   : > { %1592 = shalt.err (!%p1589_p3)
}
  0x3f   : > { %s1593_s7 = scalar_lea.vmem %s1858_s10, 512  ;;  %p1601_p12 = scmp.lt.s32.totalorder %s1858_s10, %s1858_s10 }
  0x40   : > { %p1594_p5 = scmp.ne.s32.totalorder %s1858_s10, %s1593_s7  ;;  %p1602_p0 = scmp.lt.s32.totalorder %s1593_s7, %s1593_s7 }
  0x42   : > { %p1596_p7 = pnand %p1594_p5, %p1554_p13  ;;  %p1603_p2 = por %p1602_p0, %p1601_p12 }
  0x44   : > { %p1597_p9 = pneg %p1596_p7 }
  0x46   : > { %p1604_p1 = pnand %p1603_p2, %p1597_p9 }
  0x48   : > { %1607 = shalt.err (!%p1604_p1)
}
  0x49   : > { %1469 = dma.hbm_to_vmem [thread:$0]  (!%p1854_p11), %s2169_s4, 512, %s1858_s10, [#allocation10], %s1750_s19, %s1750_s19, %s1751_s20  }
  0x4a   : > { %s1913_s26 = sadd.s32 1, %s1746_s24   ;;  %s33_s8 = sadd.s32 1, %s1742_s23 }
  0x4b   : > { %s30_s30 = ssub.s32 %s1746_s24, %s1913_s26  ;;  %p40_p13 = scmp.ne.s32.totalorder %s1742_s23, %s1738_s22 }
  0x4c   : > { %p31_p6 = scmp.eq.s32.totalorder %s30_s30, 0  ;;  %p41_p10 = scmp.eq.s32.totalorder %s1746_s24, 0 }
  0x4d   : > { %p2170_p3 = scmp.eq.s32.totalorder %s1824_s25, 1  ;;  %p1483_p7 = scmp.lt.s32.totalorder %s1746_s24, 2 }
  0x4e   : > { %s1929_s11 = scalar_select %p31_p6, %s1742_s23, %s33_s8  }
  0x4f   : > { %p1923_p5 = por %p2170_p3, %p40_p13  ;;  %p42_p9 = por %p41_p10, %p40_p13 }
  0x50   : > { %2172 = sst [smem:[#allocation17_spill]] %s1929_s11  ;;  %s238_s12 = sand.u32 1, %s1742_s23  }
  0x51   : > { %s2171_s9 = scalar_select %p1923_p5, 1, 0 }
  0x52   : > { %s1932_s10 = sshll.u32 %s238_s12, 3  ;;  %s1320_s19 = sshll.u32 %s1746_s24, 7 }
  0x53   : > { %s1938_s14 = scalar_lea.hbm %s2151_s0, %s1320_s19  ;;  %s242_s15 = scalar_lea.vmem [#allocation3], %s1932_s10 }
  0x54   : > { %s249_s16 = sshll.u32 %s242_s15, 4  ;;  %p1943_p11 = pnand %p1483_p7, %p42_p9  ;;  %s1941_s16 = int_to_ptr.vmem [resolvable:$true] %s249_s16 }
  0x55   : > { %s1950_s8 = scalar_lea.hbm %s2152_s1, %s1320_s19  ;;  %s256_s30 = sand.u32 1, %s1746_s24  }
  0x56   : > { %s239_s20 = scalar_lea.sflag [#allocation4], %s238_s12  ;;  %s1608_s13 = scalar_lea.hbm %s1938_s14, 128 }
  0x57   : > { %p1609_p12 = scmp.ne.s32.totalorder %s1938_s14, %s1608_s13  ;;  %p1610_p0 = pneg %p1943_p11 }
  0x58   : > { %s1613_s4 = scalar_lea.hbm %s2151_s0, 256  ;;  %p1614_p13 = scmp.lt.u32.totalorder %s1938_s14, %s2151_s0 }
  0x59   : > { %p1611_p2 = pnand %p1610_p0, %p1609_p12  ;;  %p1615_p6 = scmp.lt.u32.totalorder %s1613_s4, %s1608_s13 }
  0x5a   : > { %p1617_p3 = scmp.lt.u32.totalorder %s1608_s13, %s1938_s14 }
  0x5b   : > { %p1612_p1 = pneg %p1611_p2  ;;  %p1616_p10 = por %p1615_p6, %p1614_p13 }
  0x5d   : > { %p1618_p7 = por %p1617_p3, %p1616_p10 }
  0x5f   : > { %p1619_p9 = pnand %p1618_p7, %p1612_p1 }
  0x61   : > { %1622 = shalt.err (!%p1619_p9)
}
  0x62   : > { %s1623_s12 = scalar_lea.vmem %s1941_s16, 128  ;;  %s1752_s2 = smov [#allocation3]  }
  0x63   : > { %p1624_p12 = scmp.ne.s32.totalorder %s1941_s16, %s1623_s12  ;;  %s1628_s19 = sshll.u32 %s1752_s2, 4  ;;  %s1629_s19 = int_to_ptr.vmem [resolvable:$false] %s1628_s19 }
  0x64   : > { %s1630_s11 = scalar_lea.vmem %s1629_s19, 256  ;;  %p1631_p4 = scmp.lt.s32.totalorder %s1941_s16, %s1629_s19 }
  0x65   : > { %p1626_p2 = pnand %p1624_p12, %p1610_p0  ;;  %p1632_p13 = scmp.lt.s32.totalorder %s1630_s11, %s1623_s12 }
  0x67   : > { %p1627_p5 = pneg %p1626_p2  ;;  %p1633_p6 = por %p1632_p13, %p1631_p4 }
  0x69   : > { %p1634_p10 = pnand %p1633_p6, %p1627_p5 }
  0x6b   : > { %1637 = shalt.err (!%p1634_p10)
}
  0x6c   : > { %1473 = dma.hbm_to_vmem [thread:$0]  (!%p1943_p11), %s1938_s14, 128, %s1941_s16, %s239_s20  }
  0x6d   : > { %s260_s4 = scalar_lea.vmem [#allocation6], %s1932_s10  ;;  %s257_s13 = scalar_lea.sflag [#allocation7], %s256_s30 }
  0x6e   : > { %s267_s18 = sshll.u32 %s260_s4, 4  ;;  %s1638_s15 = scalar_lea.hbm %s1950_s8, 128  ;;  %s268_s18 = int_to_ptr.vmem [resolvable:$true] %s267_s18 }
  0x6f   : > { %p1639_p4 = scmp.ne.s32.totalorder %s1950_s8, %s1638_s15  ;;  %s1643_s2 = scalar_lea.hbm %s2152_s1, 256 }
  0x70   : > { %p1644_p3 = scmp.lt.u32.totalorder %s1950_s8, %s2152_s1  ;;  %p1645_p7 = scmp.lt.u32.totalorder %s1643_s2, %s1638_s15 }
  0x71   : > { %p1641_p5 = pnand %p1639_p4, %p1610_p0  ;;  %p1647_p12 = scmp.lt.u32.totalorder %s1638_s15, %s1950_s8 }
  0x72   : > { %p1646_p9 = por %p1645_p7, %p1644_p3 }
  0x73   : > { %p1642_p1 = pneg %p1641_p5 }
  0x74   : > { %p1648_p2 = por %p1647_p12, %p1646_p9 }
  0x76   : > { %p1649_p13 = pnand %p1648_p2, %p1642_p1 }
  0x78   : > { %1652 = shalt.err (!%p1649_p13)
}
  0x79   : > { %s1653_s10 = scalar_lea.vmem %s268_s18, 128  ;;  %s1753_s14 = smov [#allocation6]  }
  0x7a   : > { %p1654_p6 = scmp.ne.s32.totalorder %s268_s18, %s1653_s10  ;;  %s1658_s16 = sshll.u32 %s1753_s14, 4  ;;  %s1659_s16 = int_to_ptr.vmem [resolvable:$false] %s1658_s16 }
  0x7b   : > { %s1660_s30 = scalar_lea.vmem %s1659_s16, 256  ;;  %p1661_p5 = scmp.lt.s32.totalorder %s268_s18, %s1659_s16 }
  0x7c   : > { %p1656_p10 = pnand %p1654_p6, %p1610_p0  ;;  %p1662_p8 = scmp.lt.s32.totalorder %s1660_s30, %s1653_s10 }
  0x7e   : > { %p1657_p4 = pneg %p1656_p10  ;;  %p1663_p3 = por %p1662_p8, %p1661_p5 }
  0x80   : > { %p1664_p7 = pnand %p1663_p3, %p1657_p4 }
  0x82   : > { %1667 = shalt.err (!%p1664_p7)
}
  0x83   : > { %1476 = dma.hbm_to_vmem [thread:$0]  (!%p1943_p11), %s1950_s8, 128, %s268_s18, %s257_s13  }
  0x84   : > { %p2174_p1 = scmp.ne.s32.totalorder %s2166_s29, 0 }
  0x85   : > { %s2003_s20 = sand.u32 (!%p2174_p1), 1, %s1738_s22   ;;  %p2175_p8 = scmp.ne.s32.totalorder (!%p2174_p1), %s2164_s27, 0 }
  0x86   : > { %276 = sbr.rel (%p2174_p1) target bundleno = 1698 (0x6a2), region = 44  ;;  %s2006_s4 = sshll.u32 (!%p2174_p1), %s2003_s20, 3 }
  0x87   : > { %s279_s15 = scalar_lea.sflag (!%p2174_p1), [#allocation4], %s2003_s20  ;;  %s282_s17 = scalar_lea.vmem (!%p2174_p1), [#allocation3], %s2006_s4 }
  0x8d   : > { %1713 = dma.done.wait (%p2175_p8), %s279_s15, 128  }
  0x8e   : > { %1715 = vsyncadd (%p2175_p8), %s279_s15, 4294967168  ;;  %s287_s29 = sand.u32 1, %s1824_s25   ;;  %s291_s8 = scalar_lea.vmem [#allocation6], %s2006_s4 }
  0x8f   : > { %s288_s7 = scalar_lea.sflag [#allocation7], %s287_s29 }
  0x90   : > { %1717 = dma.done.wait (%p2175_p8), %s288_s7, 128  }
  0x91   : > { %1719 = vsyncadd (%p2175_p8), %s288_s7, 4294967168  ;;  %p2176_p11 = scmp.eq.s32.totalorder %s1824_s25, 0 }
  0x93   : > { %1721 = dma.done.wait (%p2176_p11), [#allocation7], 512   ;;  %p2177_p0 = pmov %p2176_p11 }
  0x95   : > { %1723 = vsyncadd (%p2177_p0), [#allocation7], 4294966784  ;;  %p2178_p9 = pmov %p2177_p0 }
  0x96   : > { %p2179_p12 = pmov %p2177_p0 }
  0x97   : > { %1725 = dma.done.wait (%p2178_p9), [#allocation10], 512  }
  0x98   : > { %1727 = vsyncadd (%p2179_p12), [#allocation10], 4294966784  ;;  %v1754_v0 = vmov 0.0|0.0   ;;  %vm1755_vm0 = vmmov 0   ;;  %v1756_v1 = vmov 0.0   ;;  %v335_v2 = vld [vmem:[#allocation8] sm:$0xff] }
  0x99   : > { %1437 = vmatprep.subr.bf16.mxu0 %v1754_v0  ;;  %1383 = vmatprep.mubr.msk.f32.mxu0 %vm1755_vm0, %v1756_v1  ;;  %v336_v3 = vld [vmem:[#allocation8 + $0x8] sm:$0xff]  ;;  %v337_v4 = vld [vmem:[#allocation8 + $0x10] sm:$0xff]  ;;  %v338_v6 = vld [vmem:[#allocation8 + $0x18] sm:$0xff]  ;;  %s1757_s27 = smov 120   ;;  %vm346_vm1 = vcmask 261120   ;;  %vm420_vm2 = vcmask 64512  }
  0x9a   : > { %1386 = vmatprep.subr.mxu1 %v1756_v1  ;;  %1388 = vmatprep.mubr.msk.f32.mxu1 %vm1755_vm0, %v1756_v1  ;;  %v1438_v5 = vpack.c.bf16 %v336_v3, %v335_v2  ;;  %v334_v7 = vld [vmem:[%s291_s8] sm:$0xff]  ;;  %v1441_v8 = vpack.c.bf16 %v338_v6, %v337_v4  ;;  %v333_v9 = vld [vmem:[%s282_s17] sm:$0xff]  ;;  %s1758_s12 = smov 112   ;;  %s1759_s2 = smov 104   ;;  %vm756_vm3 = vcmask 130112   ;;  %vm928_vm4 = vcmask 195712  }
  0x9b   : > { %588 = vrot.lane.b32.xlu1 %v334_v7, %s1757_s27  ;;  %1387 = vmatpush3.xpose.msk.msra.mxu1 %vm420_vm2, %v334_v7  ;;  %v1329_v10 = vld [vmem:[%s2154_s3] ss:$0 sm:$0xff]  ;;  %s1760_s19 = smov 88   ;;  %s1761_s11 = smov 96   ;;  %v1103_v6 = vld [vmem:[#allocation9] sm:$0xff]  ;;  %vm1100_vm5 = vcmask 261312  }
  0x9c   : > { %1439 = vmatpush3.bf16.msra.mxu0 %v1438_v5  ;;  %1391 = vmatprep.subr.mxu1 %v1756_v1  ;;  %s1762_s10 = smov 80   ;;  %s1763_s14 = smov 72  }
  0x9d   : > { %1440 = vmatprep.subr.bf16.mxu0 %v1754_v0  ;;  %s1764_s16 = smov 8   ;;  %s1765_s30 = smov 16  }
  0x9e   : > { %s1766_s15 = smov 24   ;;  %s1346_s7 = sshll.u32 %s1824_s25, 7 }
  0x9f   : > { %s332_s8 = scalar_lea.vmem [#allocation11], %s2006_s4  ;;  %p2180_p13 = scmp.ne.s32.totalorder %s2171_s9, 0 }
  0xa0   : > { %1442 = vmatpush3.bf16.msra.mxu0 %v1441_v8  ;;  %s1767_s25 = smov [#allocation11]  }
  0xa1   : > { %1406 = vmatprep.subr.mxu0 %v1756_v1  ;;  %s1672_s4 = sshll.u32 %s1767_s25, 4  ;;  %s1673_s4 = int_to_ptr.vmem [resolvable:$false] %s1672_s4 }
  0xa3   : > { %1384 = vmatmul.mubr.msk.f32.vlgmr.msra.gmra.mrb[0].mxu0 %vm346_vm1, %v333_v9  ;;  %v1105_v9 = vld [vmem:[#allocation9 + $0x10] sm:$0xff] }
  0xa4   : > { %1408 = vmatprep.mubr.msk.f32.mxu0 %vm1755_vm0, %v1756_v1 }
 0x10d   : > { %v589_v14 = vpop.permute.xlu1 %588 }
 0x176   : > { %v416_v11 = vpop.f32.mrb[0].mxu0 }
 0x177   : > { %v2046_v12 = vadd.f32 %v1329_v10, %v416_v11  ;;  %v1385_v13 = vpop.f32.mrb[1].mxu0  ;;  %v1106_v10 = vld [vmem:[#allocation9 + $0x18] sm:$0xff] }
 0x179   : > { %586 = vrot.lane.b32.xlu1 %v2046_v12, %s1757_s27  ;;  %1389 = vmatmul.mubr.msk.f32.vlgmr.msra.gmra.mrb[0].mxu1 %vm420_vm2, %v2046_v12  ;;  %s1202_s27 = sshll.u32 %s332_s8, 4  ;;  %s2108_s27 = int_to_ptr.vmem [resolvable:$true] %s1202_s27 }
 0x17a   : > { %1393 = vmatprep.mubr.msk.f32.mxu1 %vm1755_vm0, %v1756_v1  ;;  %p1675_p4 = scmp.lt.s32.totalorder %s2108_s27, %s1673_s4 }
 0x17d   : > { %760 = vrot.lane.b32.xlu1 %v334_v7, %s1758_s12 }
 0x181   : > { %758 = vrot.lane.b32.xlu1 %v2046_v12, %s1758_s12  ;;  %s2106_s12 = scalar_lea.hbm %s2157_s6, %s1346_s7 }
 0x185   : > { %932 = vrot.lane.b32.xlu1 %v334_v7, %s1759_s2  ;;  %v1104_v7 = vld [vmem:[#allocation9 + $0x8] sm:$0xff] }
 0x186   : > { %v1444_v8 = vpack.c.bf16 %v1104_v7, %v1103_v6 }
 0x189   : > { %930 = vrot.lane.b32.xlu1 %v2046_v12, %s1759_s2  ;;  %s1189_s2 = scalar_lea.sflag [#allocation5], %s2003_s20 }
 0x18d   : > { %674 = vrot.lane.b32.xlu1 %v2046_v12, %s1760_s19  ;;  %s1668_s19 = scalar_lea.vmem %s2108_s27, 128 }
 0x18e   : > { %p1669_p2 = scmp.ne.s32.totalorder %s2108_s27, %s1668_s19 }
 0x190   : > { %p1670_p6 = pnand %p1669_p2, %p2180_p13 }
 0x192   : > { %p1671_p10 = pneg %p1670_p6 }
 0x1eb   : > { %v587_v15 = vpop.permute.xlu1 %586 }
 0x1ef   : > { %v761_v16 = vpop.permute.xlu1 %760 }
 0x1f0   : > { %1407 = vmatpush3.xpose.msk.msra.mxu0 %vm420_vm2, %v761_v16 }
 0x1f1   : > { %1416 = vmatprep.subr.mxu0 %v1756_v1 }
 0x1f3   : > { %v759_v17 = vpop.permute.xlu1 %758 }
 0x1f4   : > { %1409 = vmatmul.mubr.msk.f32.vlgmr.msra.gmra.mrb[2].mxu0 %vm420_vm2, %v759_v17 }
 0x1f5   : > { %1418 = vmatprep.mubr.msk.f32.mxu0 %vm1755_vm0, %v1756_v1 }
 0x1f7   : > { %v933_v18 = vpop.permute.xlu1 %932 }
 0x1f8   : > { %1417 = vmatpush3.xpose.msk.msra.mxu0 %vm420_vm2, %v933_v18 }
 0x1f9   : > { %1443 = vmatprep.subr.bf16.mxu0 %v1754_v0 }
 0x1fb   : > { %v931_v19 = vpop.permute.xlu1 %930 }
 0x1fc   : > { %1419 = vmatmul.mubr.msk.f32.vlgmr.msra.gmra.mrb[4].mxu0 %vm420_vm2, %v931_v19 }
 0x1fd   : > { %1434 = vmatprep.mubr.msk.f32.mxu0 %vm1755_vm0, %v1756_v1  ;;  %1445 = vmatpush3.bf16.msra.mxu0 %v1444_v8 }
 0x1fe   : > { %1446 = vmatprep.subr.bf16.mxu0 %v1754_v0 }
 0x1ff   : > { %v675_v37 = vpop.permute.xlu1 %674 }
 0x24c   : > { %v493_v20 = vpop.f32.mrb[0].mxu1 }
 0x24d   : > { %v497_v21 = vmul.f32 0.35355338, %v493_v20  ;;  %v1390_v22 = vpop.f32.mrb[1].mxu1 }
 0x24f   : > { %v498_v23 = vsel %vm420_vm2, %v497_v21, -inf }
 0x250   : > { %499 = vmax.xlane.f32.xlu0 %v498_v23 }
 0x266   : > { %507 = vrot.lane.b32.xlu0 %v2046_v12, %s1761_s11  ;;  %s1674_s11 = scalar_lea.vmem %s1673_s4, 256 }
 0x267   : > { %p1676_p5 = scmp.lt.s32.totalorder %s1674_s11, %s1668_s19 }
 0x269   : > { %p1677_p3 = por %p1676_p5, %p1675_p4 }
 0x26b   : > { %p1678_p7 = pnand %p1677_p3, %p1671_p10 }
 0x2c7   : > { %v832_v24 = vpop.f32.mrb[2].mxu0 }
 0x2c8   : > { %v836_v25 = vmul.f32 0.35355338, %v832_v24  ;;  %v1410_v26 = vpop.f32.mrb[3].mxu0 }
 0x2c9   : > { %v1343_v26 = vld [vmem:[%s2156_s5] ss:$0 sm:$0xff] }
 0x2ca   : > { %v837_v27 = vsel %vm420_vm2, %v836_v25, -inf }
 0x2cb   : > { %838 = vmax.xlane.f32.xlu0 %v837_v27 }
 0x2cf   : > { %v1004_v28 = vpop.f32.mrb[4].mxu0 }
 0x2d0   : > { %v1008_v29 = vmul.f32 0.35355338, %v1004_v28  ;;  %v1420_v30 = vpop.f32.mrb[5].mxu0 }
 0x2d2   : > { %v1009_v31 = vsel %vm420_vm2, %v1008_v29, -inf }
 0x2d3   : > { %1010 = vmax.xlane.f32.xlu0 %v1009_v31 }
 0x2dd   : > { %v500_v32 = vpop.xlane.xlu0 %499 }
 0x2de   : > { %v501_v33 = vsub.f32 %v497_v21, %v500_v32 }
 0x2e0   : > { %v502_v34 = vmul.f32 1.442695, %v501_v33 }
 0x2e1   : > { %v508_v35 = vpop.permute.xlu0 %507 }
 0x2e2   : > { %1536 = vpow2.f32 %v502_v34  ;;  %1392 = vmatpush3.msra.mxu1 %v508_v35 }
 0x2e3   : > { %1396 = vmatprep.subr.mxu1 %v1756_v1 }
 0x2e9   : > { %846 = vrot.lane.b32.xlu0 %v2046_v12, %s1762_s10 }
 0x2ec   : > { %v1537_v36 = vpop.eup %1536 }
 0x2ed   : > { %1394 = vmatmul.mubr.msk.f32.vlgmr.msra.gmra.mrb[2].mxu1 %vm420_vm2, %v1537_v36  ;;  %v504_v61 = vsel %vm420_vm2, %v1537_v36, 0.0 }
 0x2ee   : > { %1397 = vmatpush3.xpose.msk.msra.mxu1 %vm420_vm2, %v589_v14  ;;  %1398 = vmatprep.mubr.msk.f32.mxu1 %vm1755_vm0, %v1756_v1 }
 0x2ef   : > { %1401 = vmatprep.subr.mxu1 %v1756_v1 }
 0x2f1   : > { %1399 = vmatmul.mubr.msk.f32.vlgmr.msra.gmra.mrb[4].mxu1 %vm420_vm2, %v587_v15 }
 0x2f2   : > { %1402 = vmatpush3.msra.mxu1 %v675_v37  ;;  %1403 = vmatprep.mubr.msk.f32.mxu1 %vm1755_vm0, %v1756_v1 }
 0x2f3   : > { %1411 = vmatprep.subr.mxu1 %v1756_v1 }
 0x358   : > { %v839_v38 = vpop.xlane.xlu0 %838 }
 0x359   : > { %v840_v39 = vsub.f32 %v836_v25, %v839_v38 }
 0x35b   : > { %v841_v40 = vmul.f32 1.442695, %v840_v39 }
 0x35d   : > { %1538 = vpow2.f32 %v841_v40 }
 0x360   : > { %v1011_v41 = vpop.xlane.xlu0 %1010 }
 0x361   : > { %v1012_v42 = vsub.f32 %v1008_v29, %v1011_v41 }
 0x363   : > { %v1013_v43 = vmul.f32 1.442695, %v1012_v42 }
 0x364   : > { %v847_v58 = vpop.permute.xlu0 %846 }
 0x365   : > { %1540 = vpow2.f32 %v1013_v43 }
 0x367   : > { %v1539_v44 = vpop.eup %1538 }
 0x368   : > { %v843_v45 = vsel %vm420_vm2, %v1539_v44, 0.0 }
 0x369   : > { %844 = vadd.xlane.f32.xlu0 %v843_v45 }
 0x36f   : > { %v1541_v46 = vpop.eup %1540 }
 0x370   : > { %v1015_v47 = vsel %vm420_vm2, %v1541_v46, 0.0 }
 0x371   : > { %1016 = vadd.xlane.f32.xlu0 %v1015_v47 }
 0x3c0   : > { %v579_v48 = vpop.f32.mrb[2].mxu1 }
 0x3c1   : > { %v1395_v49 = vpop.f32.mrb[3].mxu1 }
 0x3c4   : > { %v660_v50 = vpop.f32.mrb[4].mxu1 }
 0x3c5   : > { %v664_v51 = vmul.f32 0.35355338, %v660_v50  ;;  %v1400_v52 = vpop.f32.mrb[5].mxu1 }
 0x3c7   : > { %v665_v53 = vsel %vm420_vm2, %v664_v51, -inf }
 0x3c8   : > { %666 = vmax.xlane.f32.xlu1 %v665_v53 }
 0x3d9   : > { %1018 = vrot.lane.b32.xlu1 %v2046_v12, %s1763_s14  ;;  %v1447_v12 = vpack.c.bf16 %v1106_v10, %v1105_v9 }
 0x3db   : > { %1448 = vmatpush3.bf16.msra.mxu0 %v1447_v12 }
 0x3f6   : > { %v845_v4 = vpop.xlane.xlu0 %844 }
 0x3fe   : > { %v1017_v5 = vpop.xlane.xlu0 %1016 }
 0x455   : > { %v667_v54 = vpop.xlane.xlu1 %666 }
 0x456   : > { %v668_v55 = vsub.f32 %v664_v51, %v667_v54 }
 0x458   : > { %v669_v56 = vmul.f32 1.442695, %v668_v55 }
 0x459   : > { %v1019_v60 = vpop.permute.xlu1 %1018 }
 0x45a   : > { %1542 = vpow2.f32 %v669_v56 }
 0x464   : > { %v1543_v57 = vpop.eup %1542 }
 0x465   : > { %1404 = vmatmul.mubr.msk.f32.vlgmr.msra.gmra.mrb[6].mxu1 %vm420_vm2, %v1543_v57  ;;  %v671_v59 = vsel %vm420_vm2, %v1543_v57, 0.0 }
 0x466   : > { %1412 = vmatpush3.msra.mxu1 %v847_v58  ;;  %672 = vadd.xlane.f32.xlu1 %v671_v59 }
 0x467   : > { %1413 = vmatprep.mubr.msk.f32.mxu1 %vm1755_vm0, %v1756_v1  ;;  %1421 = vmatprep.subr.mxu1 %v1756_v1 }
 0x469   : > { %1414 = vmatmul.mubr.msk.f32.vlgmr.msra.gmra.mrb[8].mxu1 %vm420_vm2, %v1539_v44 }
 0x46a   : > { %1422 = vmatpush3.msra.mxu1 %v1019_v60  ;;  %505 = vadd.xlane.f32.xlu1 %v504_v61 }
 0x46b   : > { %1423 = vmatprep.mubr.msk.f32.mxu1 %vm1755_vm0, %v1756_v1 }
 0x46d   : > { %1424 = vmatmul.mubr.msk.f32.vlgmr.msra.gmra.mrb[10].mxu1 %vm420_vm2, %v1541_v46 }
 0x4f3   : > { %v673_v62 = vpop.xlane.xlu1 %672 }
 0x4f7   : > { %v506_v63 = vpop.xlane.xlu1 %505 }
 0x4f8   : > { %1544 = vrcp.f32 %v506_v63 }
 0x4f9   : > { %1546 = vrcp.f32 %v673_v62 }
 0x4fa   : > { %1548 = vrcp.f32 %v845_v4 }
 0x4fb   : > { %1550 = vrcp.f32 %v1017_v5 }
 0x502   : > { %v1545_v2 = vpop.eup %1544 }
 0x503   : > { %v584_v3 = vmul.f32 %v1545_v2, %v579_v48  ;;  %v1547_v1 = vpop.eup %1546 }
 0x504   : > { %v1549_v15 = vpop.eup %1548 }
 0x505   : > { %585 = vst.msk [vmem:[#allocation2] sm:$0xff] %vm420_vm2, %v584_v3  ;;  %v1551_v19 = vpop.eup %1550 }
 0x538   : > { %v746_v11 = vpop.f32.mrb[6].mxu1 }
 0x539   : > { %v751_v13 = vmul.f32 %v1547_v1, %v746_v11  ;;  %v1405_v14 = vpop.f32.mrb[7].mxu1 }
 0x53b   : > { %753 = vrot.lane.b32.xlu0 %v751_v13, %s1764_s16 }
 0x53c   : > { %v918_v16 = vpop.f32.mrb[8].mxu1 }
 0x53d   : > { %v923_v17 = vmul.f32 %v1549_v15, %v918_v16  ;;  %v1415_v18 = vpop.f32.mrb[9].mxu1 }
 0x53f   : > { %925 = vrot.lane.b32.xlu1 %v923_v17, %s1765_s30 }
 0x540   : > { %v1090_v20 = vpop.f32.mrb[10].mxu1 }
 0x541   : > { %v1095_v21 = vmul.f32 %v1551_v19, %v1090_v20  ;;  %v1425_v22 = vpop.f32.mrb[11].mxu1 }
 0x543   : > { %1097 = vrot.lane.b32.xlu1 %v1095_v21, %s1766_s15 }
 0x5ad   : > { %v754_v23 = vpop.permute.xlu0 %753 }
 0x5ae   : > { %757 = vst.msk [vmem:[#allocation2] sm:$0xff] %vm756_vm3, %v754_v23 }
 0x5b1   : > { %v926_v0 = vpop.permute.xlu1 %925 }
 0x5b2   : > { %929 = vst.msk [vmem:[#allocation2] sm:$0xff] %vm928_vm4, %v926_v0 }
 0x5b5   : > { %v1098_v24 = vpop.permute.xlu1 %1097 }
 0x5b6   : > { %1101 = vst.msk [vmem:[#allocation2] sm:$0xff] %vm1100_vm5, %v1098_v24 }
 0x5bd   : > { %v1102_v25 = vld [vmem:[#allocation2] sm:$0xff] }
 0x5be   : > { %1435 = vmatmul.mubr.msk.f32.vlgmr.msra.gmra.mrb[6].mxu0 %vm346_vm1, %v1102_v25 }
 0x691   : > { %v1183_v27 = vpop.f32.mrb[6].mxu0 }
 0x692   : > { %v1184_v28 = vadd.f32 %v1343_v26, %v1183_v27  ;;  %v1436_v29 = vpop.f32.mrb[7].mxu0 }
 0x694   : > { %1187 = vst.msk [vmem:[%s332_s8] sm:$0xff] %vm346_vm1, %v1184_v28 }
 0x695   : > { %1681 = shalt.err (!%p1678_p7)
}
 0x696   : > { %s1682_s20 = scalar_lea.hbm %s2106_s12, 128  ;;  %s1686_s16 = scalar_lea.hbm %s2157_s6, 256 }
 0x697   : > { %p1683_p1 = scmp.ne.s32.totalorder %s2106_s12, %s1682_s20  ;;  %p1687_p0 = scmp.lt.u32.totalorder %s2106_s12, %s2157_s6 }
 0x698   : > { %p1688_p9 = scmp.lt.u32.totalorder %s1686_s16, %s1682_s20  ;;  %p1690_p2 = scmp.lt.u32.totalorder %s1682_s20, %s2106_s12 }
 0x699   : > { %p1684_p8 = pnand %p1683_p1, %p2180_p13 }
 0x69a   : > { %p1689_p12 = por %p1688_p9, %p1687_p0 }
 0x69b   : > { %p1685_p11 = pneg %p1684_p8 }
 0x69c   : > { %p1691_p6 = por %p1690_p2, %p1689_p12 }
 0x69e   : > { %p1692_p10 = pnand %p1691_p6, %p1685_p11 }
 0x6a0   : > { %1695 = shalt.err (!%p1692_p10)
}
 0x6a1   : > { %1461 = dma.vmem_to_hbm [thread:$0]  (%p2180_p13), %s2108_s27, 128, %s2106_s12, %s1189_s2  }
 0x6a2 PF: > { %s1214_s17 = sand.u32 1, %s1734_s21   ;;  %p2181_p4 = scmp.ne.s32.totalorder %s2165_s28, 0 }
 0x6a3   : > { %p2182_p5 = scmp.ge.s32.totalorder %s1746_s24, 2  ;;  %s1215_s29 = scalar_lea.sflag [#allocation5], %s1214_s17 }
 0x6a5   : > { %p1478_p3 = pnand %p2182_p5, %p2181_p4 }
 0x6a7   : > { %1729 = dma.done.wait (!%p1478_p3), %s1215_s29, 128  }
 0x6a8   : > { %1731 = vsyncadd (!%p1478_p3), %s1215_s29, 4294967168  ;;  %s2183_s7 = sld [smem:[#allocation17_spill]]  ;;  %p23_p7 = scmp.ge.s32.totalorder %s1913_s26, 4  }
 0x6a9   : > { %s2184_s21 = smov %s1738_s22  ;;  %s2185_s22 = smov %s1742_s23 }
 0x6aa   : > { %s2187_s24 = smov %s1913_s26  ;;  %25 = sbr.rel (!%p23_p7) target bundleno = 11 (0xb), region = 110 }
 0x6ae   : > { %s2186_s23 = smov %s2183_s7 }
 0x6b1   :  { %1220 = vsyncpa [#allocation4], 1 }
 0x6b2   :  { %1222 = vsyncpa [#allocation4 + $0x1], 1 }
 0x6b3   :  { %1223 = vsyncpa [#allocation7], 1 }
 0x6b4   :  { %1225 = vsyncpa [#allocation7 + $0x1], 1 }
 0x6b5   :  { %1226 = vsyncpa [#allocation10], 1 }
 0x6b6   :  { %1227 = vsyncpa [#allocation5], 1 }
 0x6b7   :  { %1229 = vsyncpa [#allocation5 + $0x1], 1 }

</bundles_post_ra>
